<compile_context>
chip_gen: v6e
topology: v6e:2x2x1
jax: 0.10.0
libtpu: 0.0.40
codegen_flags: <defaults>
</compile_context>

<pallas_src>
import functools

import jax
import jax.numpy as jnp
from jax.experimental import pallas as pl
from jax.experimental.pallas import tpu as pltpu

# ---------------- configuration (small synthetic shapes) ----------------
TUPLE_LENGTH = 2          # deepcoder_propsig.SIGNATURE_TUPLE_LENGTH
EMBED_LENGTH = 2          # Signature.embed_length
LEN_SIGNATURE = 8         # signature length (synthetic)
HIDDEN_SIZE = 32          # val_encoder hidden_size -> output dim 2*hidden
NUM_TASKS = 8             # number of value entries to encode
NUM_OPS = 5               # number of leading OperationBase entries
VOCAB = 12                # nn.Embedding(12, 2)

D_SIG = LEN_SIGNATURE * TUPLE_LENGTH                 # 16  flattened signature width
D_IN = D_SIG * EMBED_LENGTH                          # 32  flattened embedding width
D_OUT = HIDDEN_SIZE * 2                              # 64  encoder output width
K_OH = D_SIG * VOCAB                                 # 192 one-hot contraction width
OP_PAD = 8                                           # sublane-padded op-embedding rows
TASK_TILE = 4096                                     # task tile (sweep 4096-8192)
VMEM_LIMIT = 32 * 1024 * 1024                        # scoped-VMEM headroom (all gens)


# ---------------------------- Pallas kernel ----------------------------
def encoder_kernel(sig_ref, rep_ref, vmod_ref, w1_ref, w2_ref, b2_ref, op_ref,
                   o_ref, *, num_ops):
    """Fused quantize -> one-hot embed (as matmul) -> Linear(+b1 folded) -> ReLU -> Linear."""
    sig = sig_ref[...]                                              # [TN, 16] f32

    # quantize(): torch.where(sig < 1e-8, 0, floor(sig*10)+1), clipped to the vocab.
    q = jnp.where(sig < 1e-8, 0.0, jnp.floor(sig * 10.0) + 1.0)
    q = jnp.clip(q, 0.0, float(VOCAB - 1))                          # integer-valued f32

    # Repeat each signature column VOCAB times via an exact 0/1 matmul (no gather):
    #   q_rep[n, j*12 + v] = q[n, j]      (integers 0..11 are exact in bf16)
    q_rep = jnp.dot(q.astype(jnp.bfloat16), rep_ref[...],
                    preferred_element_type=jnp.float32)             # [TN, 192]

    # One-hot over the vocab: oh[n, j*12 + v] = (q[n, j] == v).
    oh = (jnp.abs(q_rep - vmod_ref[...]) < 0.5).astype(jnp.bfloat16)

    # MLP. Embedding tables AND b1 are pre-folded into w1_eff, so oh @ w1_eff
    # reproduces flatten(embedding_lookup(q)) @ W1 + b1 exactly (up to bf16 rounding).
    h = jnp.maximum(jnp.dot(oh, w1_ref[...],
                            preferred_element_type=jnp.float32), 0.0)   # f32 epilogue
    o = jnp.dot(h.astype(jnp.bfloat16), w2_ref[...],
                preferred_element_type=jnp.float32) + b2_ref[...]
    o_ref[...] = o.astype(o_ref.dtype)                              # (tn, 64) dense store

    if num_ops > 0:
        # Ops branch: the first num_ops rows of the whole output are the learned
        # op_embedding rows (the matching signature rows were dummy zeros).
        @pl.when(pl.program_id(0) == 0)
        def _():
            row = jax.lax.broadcasted_iota(jnp.int32, (OP_PAD, D_OUT), 0)
            top = jnp.where(row < num_ops, op_ref[...], o[:OP_PAD, :])
            o_ref[pl.ds(0, OP_PAD), :] = top.astype(o_ref.dtype)


# ------------------------------ wrappers --------------------------------
def _round_up(x, m):
    return ((x + m - 1) // m) * m


def _pick_tile(m):
    """Task-tile size: 16-row aligned for tiny inputs, grid>=2 for v7x, big tiles else."""
    if m <= 512:
        return _round_up(m, 16)                       # bf16 intermediates tile at (16,128)
    if m < 2 * TASK_TILE:
        return min(TASK_TILE, _round_up((m + 1) // 2, 256))   # >=2 steps for v7x dual-TC
    return TASK_TILE


def _encode_rows(sig_in, prep, num_ops):
    """Encode [M, 16] flattened signatures -> [M, D_OUT]; first num_ops rows = op rows."""
    m = sig_in.shape[0]
    tn = _pick_tile(m)
    grid = (pl.cdiv(m, tn),)                          # no jnp.pad; tail tile is masked
    kernel = functools.partial(encoder_kernel, num_ops=num_ops)

    return pl.pallas_call(
        kernel,
        out_shape=jax.ShapeDtypeStruct((m, D_OUT), jnp.float32),
        grid_spec=pltpu.PrefetchScalarGridSpec(
            num_scalar_prefetch=0,
            grid=grid,
            in_specs=[
                pl.BlockSpec((tn, D_SIG), lambda i: (i, 0)),      # streamed signatures
                pl.BlockSpec((D_SIG, K_OH), lambda i: (0, 0)),    # repeat matrix (resident)
                pl.BlockSpec((1, K_OH), lambda i: (0, 0)),        # vocab-index row
                pl.BlockSpec((K_OH, D_OUT), lambda i: (0, 0)),    # fused W1 (+b1) resident
                pl.BlockSpec((D_OUT, D_OUT), lambda i: (0, 0)),   # W2 (resident)
                pl.BlockSpec((1, D_OUT), lambda i: (0, 0)),       # b2
                pl.BlockSpec((OP_PAD, D_OUT), lambda i: (0, 0)),  # padded op_embedding
            ],
            out_specs=pl.BlockSpec((tn, D_OUT), lambda i: (i, 0)),
        ),
        compiler_params=pltpu.CompilerParams(
            dimension_semantics=("parallel",),
            vmem_limit_bytes=VMEM_LIMIT),
    )(sig_in, prep["rep"], prep["vmod"], prep["w1_eff"], prep["w2"],
      prep["b2"], prep["op_emb"])


def prepare_params(params):
    """One-time folding (embedding tables + b1 -> W1_eff) and constant helpers.

    Call once, OUTSIDE the per-step jitted forward (no redundant refold per step)."""
    # Block-diagonal embedding matrix: W_emb[j*12 + v, 2*j + e] = table_{j%2}[v, e]
    tables = jnp.stack([params["frac_applicable_embed"],
                        params["frac_tf_embed"]], axis=0)            # [2, 12, 2]
    blocks = tables[jnp.arange(D_SIG) % 2]                           # [16, 12, 2]
    eye = jnp.eye(D_SIG, dtype=jnp.float32)
    w_emb = jnp.einsum("jk,jve->jvke", eye, blocks).reshape(K_OH, D_IN)

    # Fold b1: every one-hot row has exactly D_SIG ones -> +b1 == +D_SIG*(b1/D_SIG).
    # Fold in f32, cast once (avoids extra rounding).
    w1_eff = (w_emb @ params["w1"] + params["b1"] / float(D_SIG)).astype(jnp.bfloat16)

    # Tiny constant helper matrices (VMEM-resident across the grid):
    #   rep_mat[j, j*12+v] = 1   -> column-repeat of q by matmul
    #   vmod[0, j*12+v]   = v    -> vocab index per one-hot column
    j_of_k = jnp.arange(K_OH) // VOCAB
    rep_mat = (j_of_k[None, :] == jnp.arange(D_SIG)[:, None]).astype(jnp.bfloat16)
    vmod = (jnp.arange(K_OH) % VOCAB).astype(jnp.float32)[None, :]

    op_emb = jnp.zeros((OP_PAD, D_OUT), jnp.float32).at[:NUM_OPS].set(
        params["op_embedding"])

    return {
        "rep": rep_mat,                               # [16, 192] bf16
        "vmod": vmod,                                 # [1, 192]  f32
        "w1_eff": w1_eff,                             # [192, 64] bf16 (tables + b1 folded)
        "w2": params["w2"].astype(jnp.bfloat16),      # [64, 64]  bf16
        "b2": params["b2"].astype(jnp.float32),       # [1, 64]   f32
        "op_emb": op_emb,                             # [8, 64]   f32 (rows >= NUM_OPS zero)
    }


def value_and_op_encoder_forward(value_signatures, prep, first_values_are_ops):
    """ValueAndOpEncoder.forward.

    value_signatures: f32 [num_values, LEN_SIGNATURE, TUPLE_LENGTH] property signatures
      of the *value* entries of all_values (operations carry no signature).
    first_values_are_ops: the `isinstance(all_values[0], OperationBase)` branch.
    """
    n = value_signatures.shape[0]
    sig_flat = value_signatures.reshape(n, D_SIG)
    if first_values_are_ops:
        # Prepend NUM_OPS dummy signature rows (cheap 64 B/task stream) so the value
        # embeddings land directly at row NUM_OPS of the kernel output; the op rows are
        # written in-kernel -> no post-kernel concat / extra HBM round trip of val_embed.
        sig_in = jnp.concatenate(
            [jnp.zeros((NUM_OPS, D_SIG), sig_flat.dtype), sig_flat], axis=0)
        return _encode_rows(sig_in, prep, NUM_OPS)
    return _encode_rows(sig_flat, prep, 0)


def init_params(key):
    k = jax.random.split(key, 7)
    s1 = 1.0 / jnp.sqrt(jnp.float32(D_IN))
    s2 = 1.0 / jnp.sqrt(jnp.float32(D_OUT))
    return {
        # nn.Embedding(12, 2) -> N(0, 1) init
        "frac_applicable_embed": jax.random.normal(k[0], (VOCAB, EMBED_LENGTH), jnp.float32),
        "frac_tf_embed": jax.random.normal(k[1], (VOCAB, EMBED_LENGTH), jnp.float32),
        # nn.Linear(D_IN, D_OUT), nn.Linear(D_OUT, D_OUT); weights stored [in, out]
        "w1": jax.random.uniform(k[2], (D_IN, D_OUT), jnp.float32, -s1, s1),
        "b1": jax.random.uniform(k[3], (1, D_OUT), jnp.float32, -s1, s1),
        "w2": jax.random.uniform(k[4], (D_OUT, D_OUT), jnp.float32, -s2, s2),
        "b2": jax.random.uniform(k[5], (1, D_OUT), jnp.float32, -s2, s2),
        # ValueAndOpEncoder.op_embedding: Parameter(zeros(num_ops, hidden)) + _param_init
        "op_embedding": 0.1 * jax.random.normal(k[6], (NUM_OPS, D_OUT), jnp.float32),
    }


# ------------------------------- main ----------------------------------
if __name__ == "__main__":
    key = jax.random.PRNGKey(0)
    pkey, skey = jax.random.split(key)
    params = init_params(pkey)
    prep = prepare_params(params)        # hoisted out of the per-step forward

    # Synthetic property signatures in [0, 1] for the NUM_TASKS value entries.
    signatures = jax.random.uniform(
        skey, (NUM_TASKS, LEN_SIGNATURE, TUPLE_LENGTH), jnp.float32, 0.0, 1.0)

    fwd = jax.jit(value_and_op_encoder_forward, static_argnames="first_values_are_ops")
    out_with_ops = jax.block_until_ready(fwd(signatures, prep, first_values_are_ops=True))
    out_vals_only = jax.block_until_ready(fwd(signatures, prep, first_values_are_ops=False))

    # ---------- references ----------
    # (A) torch-semantics f32 reference: quantize -> embedding gather -> MLP.
    idx = jnp.where(signatures < 1e-8, 0,
                    jnp.floor(signatures * 10.0).astype(jnp.int32) + 1)
    idx = jnp.clip(idx, 0, VOCAB - 1)
    emb_app = params["frac_applicable_embed"][idx[:, :, 0]]            # [N, L, 2]
    emb_tf = params["frac_tf_embed"][idx[:, :, 1]]                     # [N, L, 2]
    flat = jnp.concatenate([emb_app[:, :, None, :], emb_tf[:, :, None, :]],
                           axis=2).reshape(NUM_TASKS, D_IN)
    ref_f32 = (jnp.maximum(flat @ params["w1"] + params["b1"], 0.0)
               @ params["w2"] + params["b2"])

    # (B) precision-matched reference using the same folded bf16 weights as the kernel.
    sig2d = signatures.reshape(NUM_TASKS, D_SIG)
    q_ref = jnp.clip(
        jnp.where(sig2d < 1e-8, 0, jnp.floor(sig2d * 10.0).astype(jnp.int32) + 1),
        0, VOCAB - 1)
    oh_ref = (q_ref[:, :, None] == jnp.arange(VOCAB)[None, None, :]) \
        .astype(jnp.bfloat16).reshape(NUM_TASKS, K_OH)
    h_ref = jnp.maximum(
        jnp.dot(oh_ref, prep["w1_eff"], preferred_element_type=jnp.float32), 0.0)
    ref_bf16 = jnp.dot(h_ref.astype(jnp.bfloat16), prep["w2"],
                       preferred_element_type=jnp.float32) + prep["b2"]

    # ---------- checks ----------
    assert out_with_ops.shape == (NUM_OPS + NUM_TASKS, D_OUT), out_with_ops.shape
    assert out_vals_only.shape == (NUM_TASKS, D_OUT), out_vals_only.shape
    assert bool(jnp.allclose(out_with_ops[:NUM_OPS], params["op_embedding"]))
    assert bool(jnp.allclose(out_with_ops[NUM_OPS:], out_vals_only))
    assert bool(jnp.allclose(out_vals_only, ref_bf16, atol=5e-3, rtol=5e-3)), \
        "mismatch vs precision-matched (bf16) reference"
    assert bool(jnp.allclose(out_vals_only, ref_f32, atol=3e-2, rtol=3e-2)), \
        "mismatch vs f32 torch-semantics reference"

    print("KERNEL_OK")
</pallas_src>

<mosaic_0001>
module attributes {stable_mosaic.version = 11 : i64} {
  func.func @encoder_kernel(%arg0: i32, %arg1: memref<16x16xf32, #tpu.memory_space<vmem>>, %arg2: memref<16x192xbf16, #tpu.memory_space<vmem>>, %arg3: memref<1x192xf32, #tpu.memory_space<vmem>>, %arg4: memref<192x64xbf16, #tpu.memory_space<vmem>>, %arg5: memref<64x64xbf16, #tpu.memory_space<vmem>>, %arg6: memref<1x64xf32, #tpu.memory_space<vmem>>, %arg7: memref<8x64xf32, #tpu.memory_space<vmem>>, %arg8: memref<16x64xf32, #tpu.memory_space<vmem>>) attributes {dimension_semantics = [#tpu.dimension_semantics<parallel>], iteration_bounds = array<i64: 1>, scalar_prefetch = 0 : i64, scratch_operands = 0 : i64, tpu.core_type = #tpu.core_type<tc>, window_params = [{transform_indices = @transform_0, window_bounds = array<i64: 16, 16>}, {pipeline_mode = #tpu.pipeline_mode<synchronous>, transform_indices = @transform_1, window_bounds = array<i64: 16, 192>}, {pipeline_mode = #tpu.pipeline_mode<synchronous>, transform_indices = @transform_2, window_bounds = array<i64: 1, 192>}, {pipeline_mode = #tpu.pipeline_mode<synchronous>, transform_indices = @transform_3, window_bounds = array<i64: 192, 64>}, {pipeline_mode = #tpu.pipeline_mode<synchronous>, transform_indices = @transform_4, window_bounds = array<i64: 64, 64>}, {pipeline_mode = #tpu.pipeline_mode<synchronous>, transform_indices = @transform_5, window_bounds = array<i64: 1, 64>}, {pipeline_mode = #tpu.pipeline_mode<synchronous>, transform_indices = @transform_6, window_bounds = array<i64: 8, 64>}, {transform_indices = @transform_7, window_bounds = array<i64: 16, 64>}]} {
    %c0 = arith.constant 0 : index
    %c0_0 = arith.constant 0 : index
    %0 = vector.load %arg1[%c0, %c0_0] : memref<16x16xf32, #tpu.memory_space<vmem>>, vector<16x16xf32>
    %cst = arith.constant 9.99999993E-9 : f32
    %1 = vector.broadcast %cst : f32 to vector<16x16xf32>
    %2 = arith.cmpf olt, %0, %1 : vector<16x16xf32>
    %cst_1 = arith.constant 1.000000e+01 : f32
    %3 = vector.broadcast %cst_1 : f32 to vector<16x16xf32>
    %4 = arith.mulf %0, %3 : vector<16x16xf32>
    %5 = math.floor %4 : vector<16x16xf32>
    %cst_2 = arith.constant 1.000000e+00 : f32
    %6 = vector.broadcast %cst_2 : f32 to vector<16x16xf32>
    %7 = arith.addf %5, %6 : vector<16x16xf32>
    %cst_3 = arith.constant 0.000000e+00 : f32
    %8 = vector.broadcast %cst_3 : f32 to vector<16x16xf32>
    %9 = arith.select %2, %8, %7 : vector<16x16xi1>, vector<16x16xf32>
    %cst_4 = arith.constant 0.000000e+00 : f32
    %cst_5 = arith.constant 1.100000e+01 : f32
    %10 = vector.broadcast %cst_4 : f32 to vector<16x16xf32>
    %11 = arith.maximumf %10, %9 : vector<16x16xf32>
    %12 = vector.broadcast %cst_5 : f32 to vector<16x16xf32>
    %13 = arith.minimumf %12, %11 : vector<16x16xf32>
    %14 = arith.truncf %13 : vector<16x16xf32> to vector<16x16xbf16>
    %c0_6 = arith.constant 0 : index
    %c0_7 = arith.constant 0 : index
    %15 = vector.load %arg2[%c0_6, %c0_7] : memref<16x192xbf16, #tpu.memory_space<vmem>>, vector<16x192xbf16>
    %cst_8 = arith.constant dense<0.000000e+00> : vector<16x192xf32>
    %16 = tpu.matmul %14, %15, %cst_8 {dimension_numbers = #tpu.dot_dimension_numbers<[1], [0], [0], [1], [0, 0, 1, 1], [], []>} : vector<16x16xbf16>, vector<16x192xbf16>, vector<16x192xf32> -> vector<16x192xf32>
    %c0_9 = arith.constant 0 : index
    %c0_10 = arith.constant 0 : index
    %17 = vector.load %arg3[%c0_9, %c0_10] : memref<1x192xf32, #tpu.memory_space<vmem>>, vector<1x192xf32>
    %18 = vector.broadcast %17 : vector<1x192xf32> to vector<16x192xf32>
    %19 = arith.subf %16, %18 : vector<16x192xf32>
    %20 = math.absf %19 : vector<16x192xf32>
    %cst_11 = arith.constant 5.000000e-01 : f32
    %21 = vector.broadcast %cst_11 : f32 to vector<16x192xf32>
    %22 = arith.cmpf olt, %20, %21 : vector<16x192xf32>
    %23 = arith.extui %22 : vector<16x192xi1> to vector<16x192xi32>
    %24 = arith.sitofp %23 : vector<16x192xi32> to vector<16x192xf32>
    %25 = arith.truncf %24 : vector<16x192xf32> to vector<16x192xbf16>
    %c0_12 = arith.constant 0 : index
    %c0_13 = arith.constant 0 : index
    %26 = vector.load %arg4[%c0_12, %c0_13] : memref<192x64xbf16, #tpu.memory_space<vmem>>, vector<192x64xbf16>
    %cst_14 = arith.constant dense<0.000000e+00> : vector<16x64xf32>
    %27 = tpu.matmul %25, %26, %cst_14 {dimension_numbers = #tpu.dot_dimension_numbers<[1], [0], [0], [1], [0, 0, 1, 1], [], []>} : vector<16x192xbf16>, vector<192x64xbf16>, vector<16x64xf32> -> vector<16x64xf32>
    %cst_15 = arith.constant 0.000000e+00 : f32
    %28 = vector.broadcast %cst_15 : f32 to vector<16x64xf32>
    %29 = arith.maximumf %27, %28 : vector<16x64xf32>
    %30 = arith.truncf %29 : vector<16x64xf32> to vector<16x64xbf16>
    %c0_16 = arith.constant 0 : index
    %c0_17 = arith.constant 0 : index
    %31 = vector.load %arg5[%c0_16, %c0_17] : memref<64x64xbf16, #tpu.memory_space<vmem>>, vector<64x64xbf16>
    %cst_18 = arith.constant dense<0.000000e+00> : vector<16x64xf32>
    %32 = tpu.matmul %30, %31, %cst_18 {dimension_numbers = #tpu.dot_dimension_numbers<[1], [0], [0], [1], [0, 0, 1, 1], [], []>} : vector<16x64xbf16>, vector<64x64xbf16>, vector<16x64xf32> -> vector<16x64xf32>
    %c0_19 = arith.constant 0 : index
    %c0_20 = arith.constant 0 : index
    %33 = vector.load %arg6[%c0_19, %c0_20] : memref<1x64xf32, #tpu.memory_space<vmem>>, vector<1x64xf32>
    %34 = vector.broadcast %33 : vector<1x64xf32> to vector<16x64xf32>
    %35 = arith.addf %32, %34 : vector<16x64xf32>
    %c0_21 = arith.constant 0 : index
    %c0_22 = arith.constant 0 : index
    %36 = vector.load %arg8[%c0_21, %c0_22] : memref<16x64xf32, #tpu.memory_space<vmem>>, vector<16x64xf32>
    tpu.vector_store %arg8[%c0_21, %c0_22], %35 {strides = array<i32>} : memref<16x64xf32, #tpu.memory_space<vmem>>, vector<16x64xf32>,
    %c0_i32 = arith.constant 0 : i32
    %37 = arith.cmpi eq, %arg0, %c0_i32 : i32
    %38 = arith.extui %37 : i1 to i32
    %c0_i32_23 = arith.constant 0 : i32
    %39 = arith.cmpi ne, %38, %c0_i32_23 : i32
    scf.if %39 {
      %40 = tpu.iota {dimensions = array<i32: 0>} : vector<8x64xi32>
      %c5_i32 = arith.constant 5 : i32
      %41 = vector.broadcast %c5_i32 : i32 to vector<8x64xi32>
      %42 = arith.cmpi slt, %40, %41 : vector<8x64xi32>
      %c0_24 = arith.constant 0 : index
      %c0_25 = arith.constant 0 : index
      %43 = vector.load %arg7[%c0_24, %c0_25] : memref<8x64xf32, #tpu.memory_space<vmem>>, vector<8x64xf32>
      %44 = vector.extract_strided_slice %35 {offsets = [0, 0], sizes = [8, 64], strides = [1, 1]} : vector<16x64xf32> to vector<8x64xf32>
      %45 = arith.select %42, %43, %44 : vector<8x64xi1>, vector<8x64xf32>
      %c0_26 = arith.constant 0 : index
      %c0_27 = arith.constant 0 : index
      %46 = vector.load %arg8[%c0_26, %c0_27] : memref<16x64xf32, #tpu.memory_space<vmem>>, vector<8x64xf32>
      tpu.vector_store %arg8[%c0_26, %c0_27], %45 {strides = array<i32>} : memref<16x64xf32, #tpu.memory_space<vmem>>, vector<8x64xf32>,
    } else {
    }
    return
  }
  func.func @transform_0(%arg0: i32) -> (i32, i32) {
    %c0_i32 = arith.constant 0 : i32
    %c0_i32_0 = arith.constant 0 : i32
    return %arg0, %c0_i32 : i32, i32
  }
  func.func @transform_1(%arg0: i32) -> (i32, i32) {
    %c0_i32 = arith.constant 0 : i32
    %c0_i32_0 = arith.constant 0 : i32
    %c0_i32_1 = arith.constant 0 : i32
    return %c0_i32, %c0_i32_0 : i32, i32
  }
  func.func @transform_2(%arg0: i32) -> (i32, i32) {
    %c0_i32 = arith.constant 0 : i32
    %c0_i32_0 = arith.constant 0 : i32
    %c0_i32_1 = arith.constant 0 : i32
    return %c0_i32, %c0_i32_0 : i32, i32
  }
  func.func @transform_3(%arg0: i32) -> (i32, i32) {
    %c0_i32 = arith.constant 0 : i32
    %c0_i32_0 = arith.constant 0 : i32
    %c0_i32_1 = arith.constant 0 : i32
    return %c0_i32, %c0_i32_0 : i32, i32
  }
  func.func @transform_4(%arg0: i32) -> (i32, i32) {
    %c0_i32 = arith.constant 0 : i32
    %c0_i32_0 = arith.constant 0 : i32
    %c0_i32_1 = arith.constant 0 : i32
    return %c0_i32, %c0_i32_0 : i32, i32
  }
  func.func @transform_5(%arg0: i32) -> (i32, i32) {
    %c0_i32 = arith.constant 0 : i32
    %c0_i32_0 = arith.constant 0 : i32
    %c0_i32_1 = arith.constant 0 : i32
    return %c0_i32, %c0_i32_0 : i32, i32
  }
  func.func @transform_6(%arg0: i32) -> (i32, i32) {
    %c0_i32 = arith.constant 0 : i32
    %c0_i32_0 = arith.constant 0 : i32
    %c0_i32_1 = arith.constant 0 : i32
    return %c0_i32, %c0_i32_0 : i32, i32
  }
  func.func @transform_7(%arg0: i32) -> (i32, i32) {
    %c0_i32 = arith.constant 0 : i32
    %c0_i32_0 = arith.constant 0 : i32
    return %arg0, %c0_i32 : i32, i32
  }
}

</mosaic_0001>

<bundles_post_ra>
// kernel: value_and_op_encoder_forward.1
= control target key start
LH: loop header
LB: loop body
LE: loop exit
PB: predicated region body
PF: predicated region fallthrough
CT: control target
= control target key end

     0   :  { %v486_v2 = vmov 0   ;;  %vm57_vm2 = vcmask 130048   ;;  %s610_s0 = inlined_call_operand.vmem [shape: f32[13,16], index: 0, kind: input, shape index: {}]   ;;  %s611_s1 = inlined_call_operand.vmem [shape: bf16[16,192], index: 1, kind: input, shape index: {}]   ;;  %s612_s2 = inlined_call_operand.vmem [shape: f32[1,192], index: 2, kind: input, shape index: {}]   ;;  %s613_s3 = inlined_call_operand.vmem [shape: bf16[192,64], index: 3, kind: input, shape index: {}]   ;;  %s614_s4 = inlined_call_operand.vmem [shape: bf16[64,64], index: 4, kind: input, shape index: {}]   ;;  %s615_s5 = inlined_call_operand.vmem [shape: f32[1,64], index: 5, kind: input, shape index: {}]   ;;  %s616_s6 = inlined_call_operand.vmem [shape: f32[8,64], index: 6, kind: input, shape index: {}]   ;;  %s617_s7 = inlined_call_operand.hbm [shape: f32[13,64], index: 7, kind: output, shape index: {}]  }
   0x1   :  { %v445_v0 = vld [vmem:[%s611_s1 + $0x4] ss:$8 sps:$4 sm:$0xff]   ;;  %v447_v1 = vld [vmem:[%s611_s1] ss:$8 sps:$4 sm:$0xff]   ;;  %93 = vmatprep.mubr.bf16.mxu0 %v486_v2  ;;  %238 = vmatprep.subr.bf16.mxu1 %v486_v2  ;;  %v448_v7 = vld [vmem:[%s613_s3 + $0x38] sm:$0xff]  }
   0x2   :  { %v28_v3 = vld [vmem:[%s610_s0] sm:$0xff]  ;;  %v29_v4 = vld [vmem:[%s610_s0 + $0x8] sm:$0xff]  ;;  %75 = vmatprep.subr.bf16.mxu0 %v445_v0  ;;  %239 = vmatpush1.bf16.msra.mxu1 %v448_v7  ;;  %v449_v10 = vld [vmem:[%s613_s3 + $0x30] sm:$0xff]  }
   0x3   :  { %vm30_vm0 = vcmp.lt.f32.partialorder %v28_v3, 1e-08  ;;  %v32_v5 = vmul.f32 10.0, %v28_v3  ;;  %v33_v6 = vmul.f32 10.0, %v29_v4  ;;  %76 = vmatpush1.bf16.msra.mxu0 %v447_v1  ;;  %vm31_vm1 = vcmp.lt.f32.partialorder %v29_v4, 1e-08  ;;  %240 = vmatprep.subr.bf16.mxu1 %v486_v2 }
   0x4   :  { %v450_v15 = vld [vmem:[%s613_s3 + $0x28] sm:$0xff]   ;;  %v451_v20 = vld [vmem:[%s613_s3 + $0x20] sm:$0xff]   ;;  %v452_v22 = vld [vmem:[%s613_s3 + $0x18] sm:$0xff]  }
   0x5   :  { %v34_v8 = vfloor.f32 %v32_v5  ;;  %v35_v9 = vfloor.f32 %v33_v6 }
   0x6   :  { %241 = vmatpush1.bf16.msra.mxu1 %v449_v10 }
   0x7   :  { %v36_v11 = vadd.f32 1.0, %v34_v8  ;;  %v37_v12 = vadd.f32 1.0, %v35_v9  ;;  %242 = vmatprep.subr.bf16.mxu1 %v486_v2 }
   0x9   :  { %v38_v13 = vsel %vm30_vm0, 0.0, %v36_v11  ;;  %v39_v14 = vsel %vm31_vm1, 0.0, %v37_v12 }
   0xa   :  { %v40_v16 = vmax.f32 %v38_v13, 0.0  ;;  %v41_v17 = vmax.f32 %v39_v14, 0.0  ;;  %243 = vmatpush1.bf16.msra.mxu1 %v450_v15 }
   0xb   :  { %244 = vmatprep.subr.bf16.mxu1 %v486_v2 }
   0xc   :  { %v42_v18 = vmin.f32 %v40_v16, 11.0  ;;  %v43_v19 = vmin.f32 %v41_v17, 11.0 }
   0xe   :  { %v44_v21 = vpack.c.bf16 %v43_v19, %v42_v18  ;;  %245 = vmatpush1.bf16.msra.mxu1 %v451_v20 }
  0x10   :  { %395 = vmatmul.mubr.msk.bf16.vlgmr.msra.gmra.mxu0 %vm57_vm2, %v44_v21 }
  0x11   :  { %12 = vsyncpa [#allocation3], 0  ;;  %246 = vmatprep.subr.bf16.mxu1 %v486_v2  ;;  %v453_v23 = vld [vmem:[%s613_s3 + $0x10] sm:$0xff]   ;;  %v454_v24 = vld [vmem:[%s613_s3 + $0x8] sm:$0xff]   ;;  %v487_v29 = vmov 0.0   ;;  %v106_v33 = vlaneseq  ;;  %vm234_vm6 = vcmask 523264  }
  0x12   :  { %247 = vmatpush1.bf16.msra.mxu1 %v452_v22  ;;  %v455_v25 = vld [vmem:[%s613_s3] sm:$0xff]   ;;  %v456_v26 = vld [vmem:[%s613_s3 + $0x58] sm:$0xff]   ;;  %v457_v27 = vld [vmem:[%s613_s3 + $0x50] sm:$0xff]   ;;  %426 = vmatprep.subr.bf16.mxu0 %v487_v29  ;;  %v488_v55 = vmov 1.0|1.0   ;;  %vm489_vm9 = vmmov 0  }
  0x13   :  { %248 = vmatprep.subr.bf16.mxu1 %v486_v2  ;;  %v458_v28 = vld [vmem:[%s613_s3 + $0x48] sm:$0xff]   ;;  %v459_v30 = vld [vmem:[%s613_s3 + $0x40] sm:$0xff]   ;;  %v460_v31 = vld [vmem:[%s614_s4 + $0x18] sm:$0xff]   ;;  %v107_v34 = vshrl.u32 %v106_v33, 7  ;;  %434 = vmatprep.mubr.msk.bf16.mxu0 %vm489_vm9, %v487_v29  ;;  %s490_s17 = smov [#allocation2]  }
  0x14   :  { %427 = vmatpush3.bf16.msra.mxu0 %v460_v31  ;;  %v461_v32 = vld [vmem:[%s614_s4 + $0x10] sm:$0xff]   ;;  %v104_v36 = vld [vmem:[%s612_s2] sm:$0x3]  ;;  %v462_v56 = vld [vmem:[%s614_s4 + $0x8] sm:$0xff]   ;;  %s382_s18 = sshll.u32 %s490_s17, 4  ;;  %s383_s18 = int_to_ptr.vmem [resolvable:$true] %s382_s18 }
  0x15   :  { %428 = vmatprep.subr.bf16.mxu0 %v487_v29  ;;  %v112_v35 = vsub.s32 1, %v107_v34  ;;  %v108_v37 = vsub.s32 0, %v107_v34  ;;  %v463_v57 = vld [vmem:[%s614_s4] sm:$0xff]   ;;  %vm373_vm10 = vcmp.lt.s32.totalorder %v107_v34, 5  ;;  %p469_p1 = scmp.lt.s32.totalorder %s383_s18, %s383_s18 }
  0x16   :  { %249 = vmatpush1.bf16.msra.mxu1 %v453_v23  ;;  %v415_v1 = vld [vmem:[%s615_s5] ss:$0 sm:$0xff]  ;;  %s464_s5 = scalar_lea.vmem %s383_s18, 256 }
  0x17   :  { %250 = vmatprep.subr.bf16.mxu1 %v486_v2  ;;  %v113_v38 = vrot.slane %v104_v36, %v112_v35  ;;  %v109_v40 = vrot.slane %v104_v36, %v108_v37  ;;  %v374_v3 = vld [vmem:[%s616_s6] sm:$0xff]  ;;  %p465_p0 = scmp.ne.s32.totalorder %s383_s18, %s464_s5  ;;  %p470_p2 = scmp.lt.s32.totalorder %s464_s5, %s464_s5 }
  0x18   :  { %429 = vmatpush3.bf16.msra.mxu0 %v461_v32 }
  0x19   :  { %430 = vmatprep.subr.bf16.mxu0 %v487_v29  ;;  %p471_p3 = por %p470_p2, %p469_p1 }
  0x1a   :  { %251 = vmatpush1.bf16.msra.mxu1 %v454_v24 }
  0x1b   :  { %252 = vmatprep.subr.bf16.mxu1 %v486_v2  ;;  %p472_p4 = pnand %p471_p3, %p465_p0 }
  0x1c   :  { %431 = vmatpush3.bf16.msra.mxu0 %v462_v56 }
  0x1d   :  { %432 = vmatprep.subr.bf16.mxu0 %v487_v29 }
  0x1e   :  { %253 = vmatpush1.bf16.msra.mxu1 %v455_v25 }
  0x1f   :  { %262 = vmatprep.subr.bf16.mxu1 %v486_v2 }
  0x20   :  { %433 = vmatpush3.bf16.msra.mxu0 %v463_v57 }
  0x22   :  { %263 = vmatpush2.bf16.msra.mxu1 %v456_v26 }
  0x23   :  { %264 = vmatprep.subr.bf16.mxu1 %v486_v2 }
  0x26   :  { %265 = vmatpush2.bf16.msra.mxu1 %v457_v27 }
  0x27   :  { %266 = vmatprep.subr.bf16.mxu1 %v486_v2 }
  0x2a   :  { %267 = vmatpush2.bf16.msra.mxu1 %v458_v28 }
  0x2b   :  { %268 = vmatprep.subr.bf16.mxu1 %v486_v2 }
  0x2e   :  { %269 = vmatpush2.bf16.msra.mxu1 %v459_v30 }
  0xd0   :  { %v95_v39 = vpop.f32.mrf.mxu0 }
  0xd1   :  { %v116_v46 = vsub.f32 %v95_v39, %v109_v40 }
  0xd2   :  { %v97_v41 = vpop.f32.mrf.mxu0 }
  0xd3   :  { %v117_v42 = vsub.f32 %v97_v41, %v113_v38  ;;  %v120_v51 = vand.u32 2147483647, %v116_v46 }
  0xd4   :  { %v99_v43 = vpop.f32.mrf.mxu0 }
  0xd5   :  { %v121_v44 = vand.u32 2147483647, %v117_v42  ;;  %v118_v45 = vsub.f32 %v99_v43, %v109_v40  ;;  %vm124_vm7 = vcmp.lt.f32.partialorder %v120_v51, 0.5 }
  0xd6   :  { %v101_v47 = vpop.f32.mrf.mxu0 }
  0xd7   :  { %v119_v48 = vsub.f32 %v101_v47, %v113_v38  ;;  %v122_v49 = vand.u32 2147483647, %v118_v45  ;;  %vm125_vm3 = vcmp.lt.f32.partialorder %v121_v44, 0.5 }
  0xd8   :  { %v397_v52 = vsel %vm125_vm3, 1.0, %v487_v29 }
  0xd9   :  { %v123_v50 = vand.u32 2147483647, %v119_v48  ;;  %vm126_vm5 = vcmp.lt.f32.partialorder %v122_v49, 0.5 }
  0xda   :  { %vm413_vm8 = vmpackc.low %vm126_vm5, %vm124_vm7 }
  0xdb   :  { %vm127_vm4 = vcmp.lt.f32.partialorder %v123_v50, 0.5 }
  0xdc   :  { %v399_v53 = vsel %vm127_vm4, 1.0, %v487_v29 }
  0xdd   :  { %v137_v54 = vpack.c.bf16 %v399_v53, %v397_v52 }
  0xdf   :  { %412 = vmatprep.mubr.msk.bf16.mxu1 %vm234_vm6, %v137_v54 }
  0xe0   :  { %414 = vmatmul.mubr.msk.bf16.vlgmr.msra.gmra.mxu1 %vm413_vm8, %v488_v55 }
 0x1a0   :  { %v272_v58 = vpop.f32.mrf.mxu1 }
 0x1a1   :  { %v279_v61 = vmax.f32 %v272_v58, 0.0 }
 0x1a2   :  { %v274_v59 = vpop.f32.mrf.mxu1 }
 0x1a4   :  { %v275_v60 = vpop.f32.mrf.mxu1 }
 0x1a5   :  { %v280_v62 = vmax.f32 %v275_v60, 0.0 }
 0x1a6   :  { %v277_v63 = vpop.f32.mrf.mxu1 }
 0x1a7   :  { %v281_v0 = vpack.c.bf16 %v280_v62, %v279_v61 }
 0x1a9   :  { %435 = vmatmul.mubr.msk.bf16.vlgmr.msra.gmra.mxu0 %vm234_vm6, %v281_v0 }
 0x269   :  { %v358_v2 = vpop.f32.mrf.mxu0 }
 0x26a   :  { %v359_v4 = vadd.f32 %v415_v1, %v358_v2 }
 0x26b   :  { %v436_v5 = vpop.f32.mrf.mxu0 }
 0x26c   :  { %365 = vst.msk [vmem:[#allocation2] sm:$0xff] %vm234_vm6, %v359_v4  ;;  %v375_v6 = vsel %vm373_vm10, %v374_v3, %v359_v4 }
 0x26d   :  { %376 = vst.msk [vmem:[#allocation2] sm:$0xff] %vm234_vm6, %v375_v6  ;;  %v361_v7 = vpop.f32.mrf.mxu0 }
 0x26e   :  { %v362_v8 = vadd.f32 %v415_v1, %v361_v7 }
 0x26f   :  { %v437_v9 = vpop.f32.mrf.mxu0 }
 0x270   :  { %366 = vst.msk [vmem:[#allocation2 + $0x8] sm:$0xff] %vm234_vm6, %v362_v8 }
 0x271   :  { %475 = shalt.err (!%p472_p4)
}
 0x272   :  { %s491_s6 = smov 128   ;;  %s492_s19 = smov 8  }
 0x273   :  { %388 = dma.vmem_to_hbm [thread:$0]  %s383_s18, 256, %s617_s7, [#allocation3], %s491_s6, %s491_s6, %s492_s19  }
 0x274   :  { %484 = dma.done.wait [#allocation3], 256  }
 0x275   :  { %485 = vsyncadd [#allocation3], 4294967040 }
 0x276   :  { %392 = vsyncpa [#allocation3], 1 }

</bundles_post_ra>
